<compile_context>
chip_gen: v7x
topology: tpu7x:2x2x1
jax: 0.10.0
libtpu: 0.0.40
codegen_flags: <defaults>
</compile_context>

<pallas_src>
import jax
import jax.numpy as jnp
import numpy as np
from jax.experimental import pallas as pl
from jax.experimental.pallas import tpu as pltpu


def _cfg_kernel(sigma_ref, cscale_ref,       # SMEM scalars
                x_ref, cu_ref, cc_ref, wt_ref, pt_ref,
                out_ref):
    b = pl.program_id(0)

    sigma = sigma_ref[b]                     # scalar (SMEM)
    cscale = cscale_ref[0]                   # scalar (SMEM)
    scale = 1.0 / (sigma * sigma + 1.0)

    # ---- tiny cond-bias path (VPU/XLU), hoisted before the main tile ----
    pt = pt_ref[...]                                        # [C, Hd] (= P^T)
    cm_u = jnp.mean(cu_ref[0], axis=0, keepdims=True)       # [1, Hd]
    cm_c = jnp.mean(cc_ref[0], axis=0, keepdims=True)       # [1, Hd]
    bias_u = jnp.sum(pt * cm_u, axis=1, keepdims=True)      # [C, 1]
    bias_c = jnp.sum(pt * cm_c, axis=1, keepdims=True)      # [C, 1]
    # CFG combine folded into the bias:  u + (c-u)*s  ==  y*scale + bias
    bias = (1.0 - cscale) * bias_u + cscale * bias_c        # [C, 1]

    # ---- main tile: single channel-mix matmul, lane-dense in HW ----
    # NOTE: sharing y between the two CFG halves is valid because the wrapper
    # guarantees x and sigma are identical across halves (torch.cat([x]*2)).
    y = jnp.dot(wt_ref[...], x_ref[0],
                preferred_element_type=jnp.float32)         # [C, tile_hw]

    out_ref[0] = (y * scale + bias).astype(out_ref.dtype)


def _pick_hw_tile(hw):
    """Largest multiple-of-128 divisor of hw up to 2048; full hw if small."""
    if hw <= 2048 or hw % 128 != 0:
        return hw
    tile = 2048
    while hw % tile:
        tile -= 128
    return tile


def cfg_denoise_pallas(x, sigma, uncond, cond, wt, pt, cond_scale):
    """x: [B, C, HW]  sigma: [B]  uncond/cond: [B, S, Hd]  wt: [C, C]  pt: [C, Hd]."""
    b, c, hw = x.shape
    _, s, hd = cond.shape

    sigma = jnp.asarray(sigma, jnp.float32).reshape(b)
    cscale = jnp.asarray(cond_scale, jnp.float32).reshape(1)

    tile_hw = _pick_hw_tile(hw)
    n_hw = hw // tile_hw

    smem_spec = pl.BlockSpec(memory_space=pltpu.MemorySpace.SMEM)

    out = pl.pallas_call(
        _cfg_kernel,
        out_shape=jax.ShapeDtypeStruct((b, c, hw), jnp.float32),
        grid_spec=pltpu.PrefetchScalarGridSpec(
            num_scalar_prefetch=0,
            grid=(b, n_hw),
            in_specs=[
                smem_spec,                                              # sigma [B]
                smem_spec,                                              # cond_scale [1]
                pl.BlockSpec((1, c, tile_hw), lambda i, j: (i, 0, j)),  # x   [B,C,HW]
                pl.BlockSpec((1, s, hd), lambda i, j: (i, 0, 0)),       # uncond emb
                pl.BlockSpec((1, s, hd), lambda i, j: (i, 0, 0)),       # cond emb
                pl.BlockSpec((c, c), lambda i, j: (0, 0)),              # W^T
                pl.BlockSpec((c, hd), lambda i, j: (0, 0)),             # P^T
            ],
            out_specs=pl.BlockSpec((1, c, tile_hw), lambda i, j: (i, 0, j)),
        ),
        compiler_params=pltpu.CompilerParams(
            dimension_semantics=("parallel", "parallel")),
    )(sigma, cscale, x, uncond, cond, wt, pt)
    return out


class CFGMaskedDenoiser:
    """JAX/Pallas port of the PyTorch CFGMaskedDenoiser wrapper."""

    def __init__(self, w, p):
        # synthetic inner-model parameters; transposes precomputed once so the
        # kernel's channel-mix / bias contraction are lane-dense in HW.
        self.w = jnp.asarray(w)          # [C, C]
        self.p = jnp.asarray(p)          # [Hd, C]
        self.wt = self.w.T               # [C, C]
        self.pt = self.p.T               # [C, Hd]

    def __call__(self, x, sigma, uncond, cond, cond_scale, mask, x0):
        # `mask` and `x0` are accepted but unused, exactly like the reference.
        b, c, h, wdim = x.shape
        hw = h * wdim
        x_flat = x.reshape(b, c, hw)     # NCHW kept; pure reshape, no transpose

        concrete = isinstance(cond_scale, (int, float))
        if uncond is None or (concrete and cond_scale == 1):
            # Fast path: denoised = inner(x, sigma, cond); no batch doubling.
            # With cscale=1 the in-kernel combine reduces exactly to bias_c.
            out_flat = cfg_denoise_pallas(x_flat, sigma, cond, cond,
                                          self.wt, self.pt, 1.0)
        else:
            out_flat = cfg_denoise_pallas(x_flat, sigma, uncond, cond,
                                          self.wt, self.pt, cond_scale)

        return out_flat.reshape(b, c, h, wdim)


# ---------------------------------------------------------------------------
# plain-JAX reference mirroring the PyTorch forward (with the explicit cat /
# chunk duplication) for correctness checking.
# ---------------------------------------------------------------------------
def _inner_model_ref(x_nchw, sigma, cond, w, p):
    n, c, h, wd = x_nchw.shape
    x_flat = jnp.transpose(x_nchw, (0, 2, 3, 1)).reshape(n, h * wd, c)
    bias = jnp.mean(cond, axis=1) @ p                        # [N, C]
    scale = 1.0 / (sigma * sigma + 1.0)                      # [N]
    y = jnp.einsum("nsc,ck->nsk", x_flat, w)
    out = y * scale[:, None, None] + bias[:, None, :]
    return jnp.transpose(out.reshape(n, h, wd, c), (0, 3, 1, 2))


def _cfg_ref(x, sigma, uncond, cond, cond_scale, w, p):
    if uncond is None or cond_scale == 1:
        return _inner_model_ref(x, sigma, cond, w, p)
    x_in = jnp.concatenate([x, x], axis=0)
    sigma_in = jnp.concatenate([sigma, sigma], axis=0)
    cond_in = jnp.concatenate([uncond, cond], axis=0)
    both = _inner_model_ref(x_in, sigma_in, cond_in, w, p)
    b = x.shape[0]
    u, c_ = both[:b], both[b:]
    return u + (c_ - u) * cond_scale


if __name__ == "__main__":
    key = jax.random.PRNGKey(0)
    k_x, k_u, k_c, k_w, k_p, k_s = jax.random.split(key, 6)

    B, C, H, W = 2, 4, 16, 16
    S, HD = 8, 32
    cond_scale = 7.5

    x = jax.random.normal(k_x, (B, C, H, W), dtype=jnp.float32)
    sigma = jax.random.uniform(k_s, (B,), dtype=jnp.float32, minval=0.5, maxval=2.0)
    uncond = jax.random.normal(k_u, (B, S, HD), dtype=jnp.float32)
    cond = jax.random.normal(k_c, (B, S, HD), dtype=jnp.float32)
    mask = jnp.ones((B, 1, H, W), dtype=jnp.float32)   # unused (as in reference)
    x0 = jnp.zeros((B, C, H, W), dtype=jnp.float32)    # unused (as in reference)

    w_param = jax.random.normal(k_w, (C, C), dtype=jnp.float32) * 0.2
    p_param = jax.random.normal(k_p, (HD, C), dtype=jnp.float32) * 0.1

    model = CFGMaskedDenoiser(w_param, p_param)

    # --- CFG path ---
    out = model(x, sigma, uncond, cond, cond_scale, mask, x0)
    out = jax.block_until_ready(out)
    ref = _cfg_ref(x, sigma, uncond, cond, cond_scale, w_param, p_param)
    assert out.shape == (B, C, H, W) and out.dtype == jnp.float32
    np.testing.assert_allclose(np.asarray(out), np.asarray(ref),
                               rtol=1e-5, atol=1e-5)

    # --- fast path (uncond is None) ---
    out_fast = model(x, sigma, None, cond, cond_scale, mask, x0)
    out_fast = jax.block_until_ready(out_fast)
    ref_fast = _cfg_ref(x, sigma, None, cond, cond_scale, w_param, p_param)
    np.testing.assert_allclose(np.asarray(out_fast), np.asarray(ref_fast),
                               rtol=1e-5, atol=1e-5)

    print("KERNEL_OK")
</pallas_src>

<mosaic_0001>
module attributes {stable_mosaic.version = 11 : i64} {
  func.func @_cfg_kernel(%arg0: i32, %arg1: i32, %arg2: memref<2xf32, #tpu.memory_space<smem>>, %arg3: memref<1xf32, #tpu.memory_space<smem>>, %arg4: memref<1x4x256xf32, #tpu.memory_space<vmem>>, %arg5: memref<1x8x32xf32, #tpu.memory_space<vmem>>, %arg6: memref<1x8x32xf32, #tpu.memory_space<vmem>>, %arg7: memref<4x4xf32, #tpu.memory_space<vmem>>, %arg8: memref<4x32xf32, #tpu.memory_space<vmem>>, %arg9: memref<1x4x256xf32, #tpu.memory_space<vmem>>) attributes {dimension_semantics = [#tpu.dimension_semantics<parallel>, #tpu.dimension_semantics<parallel>], iteration_bounds = array<i64: 2, 1>, scalar_prefetch = 0 : i64, scratch_operands = 0 : i64, tpu.core_type = #tpu.core_type<tc>, window_params = [{transform_indices = @transform_0, window_bounds = array<i64: 2>}, {transform_indices = @transform_1, window_bounds = array<i64: 1>}, {transform_indices = @transform_2, window_bounds = array<i64: 1, 4, 256>}, {transform_indices = @transform_3, window_bounds = array<i64: 1, 8, 32>}, {transform_indices = @transform_4, window_bounds = array<i64: 1, 8, 32>}, {pipeline_mode = #tpu.pipeline_mode<synchronous>, transform_indices = @transform_5, window_bounds = array<i64: 4, 4>}, {pipeline_mode = #tpu.pipeline_mode<synchronous>, transform_indices = @transform_6, window_bounds = array<i64: 4, 32>}, {transform_indices = @transform_7, window_bounds = array<i64: 1, 4, 256>}]} {
    %0 = arith.index_cast %arg0 : i32 to index
    %1 = memref.load %arg2[%0] : memref<2xf32, #tpu.memory_space<smem>>
    %c0 = arith.constant 0 : index
    %2 = memref.load %arg3[%c0] : memref<1xf32, #tpu.memory_space<smem>>
    %3 = arith.mulf %1, %1 : f32
    %cst = arith.constant 1.000000e+00 : f32
    %4 = arith.addf %3, %cst : f32
    %cst_0 = arith.constant 1.000000e+00 : f32
    %5 = arith.divf %cst_0, %4 : f32
    %c0_1 = arith.constant 0 : index
    %c0_2 = arith.constant 0 : index
    %6 = vector.load %arg8[%c0_1, %c0_2] : memref<4x32xf32, #tpu.memory_space<vmem>>, vector<4x32xf32>
    %c0_3 = arith.constant 0 : index
    %c0_4 = arith.constant 0 : index
    %c0_5 = arith.constant 0 : index
    %7 = vector.load %arg5[%c0_3, %c0_4, %c0_5] : memref<1x8x32xf32, #tpu.memory_space<vmem>>, vector<1x8x32xf32>
    %8 = vector.shape_cast %7 : vector<1x8x32xf32> to vector<8x32xf32>
    %cst_6 = arith.constant dense<0.000000e+00> : vector<32xf32>
    %9 = vector.multi_reduction <add>, %8, %cst_6 [0] : vector<8x32xf32> to vector<32xf32>
    %10 = vector.shape_cast %9 : vector<32xf32> to vector<1x32xf32>
    %cst_7 = arith.constant 8.000000e+00 : f32
    %11 = vector.broadcast %cst_7 : f32 to vector<1x32xf32>
    %12 = arith.divf %10, %11 : vector<1x32xf32>
    %c0_8 = arith.constant 0 : index
    %c0_9 = arith.constant 0 : index
    %c0_10 = arith.constant 0 : index
    %13 = vector.load %arg6[%c0_8, %c0_9, %c0_10] : memref<1x8x32xf32, #tpu.memory_space<vmem>>, vector<1x8x32xf32>
    %14 = vector.shape_cast %13 : vector<1x8x32xf32> to vector<8x32xf32>
    %cst_11 = arith.constant dense<0.000000e+00> : vector<32xf32>
    %15 = vector.multi_reduction <add>, %14, %cst_11 [0] : vector<8x32xf32> to vector<32xf32>
    %16 = vector.shape_cast %15 : vector<32xf32> to vector<1x32xf32>
    %cst_12 = arith.constant 8.000000e+00 : f32
    %17 = vector.broadcast %cst_12 : f32 to vector<1x32xf32>
    %18 = arith.divf %16, %17 : vector<1x32xf32>
    %19 = vector.broadcast %12 : vector<1x32xf32> to vector<4x32xf32>
    %20 = arith.mulf %6, %19 : vector<4x32xf32>
    %cst_13 = arith.constant dense<0.000000e+00> : vector<4xf32>
    %21 = vector.multi_reduction <add>, %20, %cst_13 [1] : vector<4x32xf32> to vector<4xf32>
    %22 = vector.shape_cast %21 : vector<4xf32> to vector<4x1xf32>
    %23 = vector.broadcast %18 : vector<1x32xf32> to vector<4x32xf32>
    %24 = arith.mulf %6, %23 : vector<4x32xf32>
    %cst_14 = arith.constant dense<0.000000e+00> : vector<4xf32>
    %25 = vector.multi_reduction <add>, %24, %cst_14 [1] : vector<4x32xf32> to vector<4xf32>
    %26 = vector.shape_cast %25 : vector<4xf32> to vector<4x1xf32>
    %cst_15 = arith.constant 1.000000e+00 : f32
    %27 = arith.subf %cst_15, %2 : f32
    %28 = vector.broadcast %27 : f32 to vector<4x1xf32>
    %29 = arith.mulf %28, %22 : vector<4x1xf32>
    %30 = vector.broadcast %2 : f32 to vector<4x1xf32>
    %31 = arith.mulf %30, %26 : vector<4x1xf32>
    %32 = arith.addf %29, %31 : vector<4x1xf32>
    %c0_16 = arith.constant 0 : index
    %c0_17 = arith.constant 0 : index
    %33 = vector.load %arg7[%c0_16, %c0_17] : memref<4x4xf32, #tpu.memory_space<vmem>>, vector<4x4xf32>
    %c0_18 = arith.constant 0 : index
    %c0_19 = arith.constant 0 : index
    %c0_20 = arith.constant 0 : index
    %34 = vector.load %arg4[%c0_18, %c0_19, %c0_20] : memref<1x4x256xf32, #tpu.memory_space<vmem>>, vector<1x4x256xf32>
    %35 = vector.shape_cast %34 : vector<1x4x256xf32> to vector<4x256xf32>
    %cst_21 = arith.constant dense<0.000000e+00> : vector<4x256xf32>
    %36 = tpu.matmul %33, %35, %cst_21 {dimension_numbers = #tpu.dot_dimension_numbers<[1], [0], [0], [1], [0, 0, 1, 1], [], []>} : vector<4x4xf32>, vector<4x256xf32>, vector<4x256xf32> -> vector<4x256xf32>
    %37 = vector.broadcast %5 : f32 to vector<4x256xf32>
    %38 = arith.mulf %36, %37 : vector<4x256xf32>
    %39 = vector.broadcast %32 : vector<4x1xf32> to vector<4x256xf32>
    %40 = arith.addf %38, %39 : vector<4x256xf32>
    %c0_22 = arith.constant 0 : index
    %c0_23 = arith.constant 0 : index
    %c0_24 = arith.constant 0 : index
    %41 = vector.load %arg9[%c0_22, %c0_23, %c0_24] : memref<1x4x256xf32, #tpu.memory_space<vmem>>, vector<1x4x256xf32>
    %42 = vector.shape_cast %41 : vector<1x4x256xf32> to vector<4x256xf32>
    %43 = vector.shape_cast %40 : vector<4x256xf32> to vector<1x4x256xf32>
    tpu.vector_store %arg9[%c0_22, %c0_23, %c0_24], %43 {strides = array<i32>} : memref<1x4x256xf32, #tpu.memory_space<vmem>>, vector<1x4x256xf32>,
    return
  }
  func.func @transform_0(%arg0: i32, %arg1: i32) -> i32 {
    %c0_i32 = arith.constant 0 : i32
    %c0_i32_0 = arith.constant 0 : i32
    return %c0_i32 : i32
  }
  func.func @transform_1(%arg0: i32, %arg1: i32) -> i32 {
    %c0_i32 = arith.constant 0 : i32
    %c0_i32_0 = arith.constant 0 : i32
    return %c0_i32 : i32
  }
  func.func @transform_2(%arg0: i32, %arg1: i32) -> (i32, i32, i32) {
    %c0_i32 = arith.constant 0 : i32
    %c0_i32_0 = arith.constant 0 : i32
    return %arg0, %c0_i32, %arg1 : i32, i32, i32
  }
  func.func @transform_3(%arg0: i32, %arg1: i32) -> (i32, i32, i32) {
    %c0_i32 = arith.constant 0 : i32
    %c0_i32_0 = arith.constant 0 : i32
    %c0_i32_1 = arith.constant 0 : i32
    return %arg0, %c0_i32, %c0_i32_0 : i32, i32, i32
  }
  func.func @transform_4(%arg0: i32, %arg1: i32) -> (i32, i32, i32) {
    %c0_i32 = arith.constant 0 : i32
    %c0_i32_0 = arith.constant 0 : i32
    %c0_i32_1 = arith.constant 0 : i32
    return %arg0, %c0_i32, %c0_i32_0 : i32, i32, i32
  }
  func.func @transform_5(%arg0: i32, %arg1: i32) -> (i32, i32) {
    %c0_i32 = arith.constant 0 : i32
    %c0_i32_0 = arith.constant 0 : i32
    %c0_i32_1 = arith.constant 0 : i32
    return %c0_i32, %c0_i32_0 : i32, i32
  }
  func.func @transform_6(%arg0: i32, %arg1: i32) -> (i32, i32) {
    %c0_i32 = arith.constant 0 : i32
    %c0_i32_0 = arith.constant 0 : i32
    %c0_i32_1 = arith.constant 0 : i32
    return %c0_i32, %c0_i32_0 : i32, i32
  }
  func.func @transform_7(%arg0: i32, %arg1: i32) -> (i32, i32, i32) {
    %c0_i32 = arith.constant 0 : i32
    %c0_i32_0 = arith.constant 0 : i32
    return %arg0, %c0_i32, %arg1 : i32, i32, i32
  }
}

</mosaic_0001>

<bundles_post_ra>
// kernel: tpu_custom_call.1
= control target key start
LH: loop header
LB: loop body
LE: loop exit
PB: predicated region body
PF: predicated region fallthrough
CT: control target
= control target key end

     0   :  { %s1346_s0 = inlined_call_operand.vmem [shape: f32[2], index: 0, kind: input, shape index: {}]   ;;  %s1347_s1 = inlined_call_operand.<no memory space> [shape: f32[1], index: 1, kind: input, shape index: {}]   ;;  %s1348_s2 = inlined_call_operand.hbm [shape: f32[2,4,256], index: 2, kind: input, shape index: {}]   ;;  %s1349_s3 = inlined_call_operand.hbm [shape: f32[2,8,32], index: 3, kind: input, shape index: {}]   ;;  %s1350_s4 = inlined_call_operand.hbm [shape: f32[2,8,32], index: 4, kind: input, shape index: {}]   ;;  %s1351_s5 = inlined_call_operand.vmem [shape: f32[4,4], index: 5, kind: input, shape index: {}]   ;;  %s1352_s6 = inlined_call_operand.vmem [shape: f32[4,32], index: 6, kind: input, shape index: {}]   ;;  %s1353_s7 = inlined_call_operand.hbm [shape: f32[2,4,256], index: 7, kind: output, shape index: {}]  }
   0x1   :  { %1369 = sst [smem:[#allocation22_spill]] %s1346_s0 }
   0x2   :  { %1370 = sst [smem:[#allocation23_spill]] %s1349_s3 }
   0x3   :  { %12 = sst [smem:[#allocation2]] %s1347_s1 }
   0x4   :  { %13 = vsyncpa [#allocation6], 0 }
   0x5   :  { %14 = vsyncpa [#allocation4], 0 }
   0x6   :  { %16 = vsyncpa [#allocation4 + $0x1], 0 }
   0x7   :  { %17 = vsyncpa [#allocation9], 0 }
   0x8   :  { %19 = vsyncpa [#allocation9 + $0x1], 0 }
   0x9   :  { %20 = vsyncpa [#allocation5], 0 }
   0xa   :  { %22 = vsyncpa [#allocation5 + $0x1], 0  ;;  %s1057_s26 = smov 0   ;;  %s1059_s27 = smov 0  }
   0xb   :  { %s1061_s28 = smov 0   ;;  %s1063_s29 = smov 0  }
   0xc   :  { %s1065_s30 = smov 0   ;;  %s1067_s8 = smov 0  }
   0xd LB: > { %1371 = sst [smem:[#allocation16_spill]] %s994_s28  ;;  %s40_s1 = sadd.s32 1, %s1002_s30  ;;  %s1006_s8 = sphi %s1067_s8, %s28_s8   ;;  %s1002_s30 = sphi %s1065_s30, %s1403_s30   ;;  %s998_s29 = sphi %s1063_s29, %s1402_s29   ;;  %s994_s28 = sphi %s1061_s28, %s1401_s28   ;;  %s990_s27 = sphi %s1059_s27, %s1405_s27   ;;  %s986_s26 = sphi %s1057_s26, %s1404_s26  }
   0xe   : > { %1372 = sst [smem:[#allocation17_spill]] %s1002_s30  ;;  %s91_s9 = sadd.s32 1, %s994_s28 }
   0xf   : > { %1373 = sst [smem:[#allocation18_spill]] %s1006_s8  ;;  %p42_p0 = scmp.ge.s32.totalorder %s40_s1, 2 }
  0x10   : > { %p1354_p1 = scmp.ne.s32.totalorder %s994_s28, %s990_s27  ;;  %p99_p2 = scmp.eq.s32.totalorder %s1006_s8, 0 }
  0x11   : > { %s1407_s1 = smov (%p42_p0, %s40_s1), 0  ;;  %p755_p5 = scmp.lt.s32.totalorder %s1006_s8, 2 }
  0x12   : > { %1374 = sst [smem:[#allocation19_spill]] %s1407_s1  ;;  %p100_p4 = por %p99_p2, %p1354_p1 }
  0x13   : > { %s86_s10 = ssub.s32 %s1002_s30, %s1407_s1  ;;  %s1355_s11 = sand.u32 1, %s994_s28  }
  0x14   : > { %p89_p6 = scmp.eq.s32.totalorder %s86_s10, 0  ;;  %s1104_s12 = sshll.u32 %s1355_s11, 3 }
  0x15   : > { %s1107_s13 = sshll.u32 %s1002_s30, 7  ;;  %p1109_p7 = pnand %p755_p5, %p100_p4 }
  0x16   : > { %s1114_s15 = scalar_select %p89_p6, %s994_s28, %s91_s9  }
  0x17   : > { %s1375_s14 = scalar_select %p1109_p7, 1, 0 }
  0x18   : > { %1376 = sst [smem:[#allocation20_spill]] %s1114_s15  ;;  %s291_s16 = sand.u32 1, %s1006_s8  }
  0x19   : > { %s1377_s3 = sld [smem:[#allocation23_spill]]  ;;  %s295_s20 = scalar_lea.vmem [#allocation8], %s1104_s12 }
  0x1a   : > { %s302_s21 = sshll.u32 %s295_s20, 4  ;;  %s1126_s22 = scalar_lea.sflag [#allocation9], %s291_s16  ;;  %s1124_s21 = int_to_ptr.vmem [resolvable:$true] %s302_s21 }
  0x1b   : > { %p1132_p9 = pneg %p1109_p7 }
  0x1f   : > { %s1121_s19 = scalar_lea.hbm %s1377_s3, %s1107_s13  ;;  %s816_s10 = scalar_lea.hbm %s1377_s3, 256 }
  0x20   : > { %s811_s23 = scalar_lea.hbm %s1121_s19, 128  ;;  %p817_p12 = scmp.lt.u32.totalorder %s1121_s19, %s1377_s3 }
  0x21   : > { %p812_p8 = scmp.ne.s32.totalorder %s1121_s19, %s811_s23  ;;  %p818_p13 = scmp.lt.u32.totalorder %s816_s10, %s811_s23 }
  0x22   : > { %p820_p2 = scmp.lt.u32.totalorder %s811_s23, %s1121_s19 }
  0x23   : > { %p814_p10 = pnand %p1132_p9, %p812_p8  ;;  %p819_p0 = por %p818_p13, %p817_p12 }
  0x25   : > { %p815_p11 = pneg %p814_p10  ;;  %p821_p4 = por %p820_p2, %p819_p0 }
  0x27   : > { %p822_p5 = pnand %p821_p4, %p815_p11 }
  0x29   : > { %825 = shalt.err (!%p822_p5)
}
  0x2a   : > { %s826_s16 = scalar_lea.vmem %s1124_s21, 128  ;;  %s1008_s20 = smov [#allocation8]  }
  0x2b   : > { %p827_p6 = scmp.ne.s32.totalorder %s1124_s21, %s826_s16  ;;  %s831_s25 = sshll.u32 %s1008_s20, 4  ;;  %s832_s25 = int_to_ptr.vmem [resolvable:$false] %s831_s25 }
  0x2c   : > { %s833_s9 = scalar_lea.vmem %s832_s25, 256  ;;  %p834_p3 = scmp.lt.s32.totalorder %s1124_s21, %s832_s25 }
  0x2d   : > { %p829_p8 = pnand %p827_p6, %p1132_p9  ;;  %p835_p1 = scmp.lt.s32.totalorder %s833_s9, %s826_s16 }
  0x2f   : > { %p830_p10 = pneg %p829_p8  ;;  %p836_p12 = por %p835_p1, %p834_p3 }
  0x31   : > { %p837_p13 = pnand %p836_p12, %p830_p10 }
  0x33   : > { %840 = shalt.err (!%p837_p13)
}
  0x34   : > { %746 = dma.hbm_to_vmem [thread:$0]  (!%p1109_p7), %s1121_s19, 128, %s1124_s21, %s1126_s22  }
  0x35   : > { %s1157_s23 = sadd.s32 4294967295, %s1006_s8   ;;  %s695_s10 = sadd.s32 4294967294, %s1006_s8  }
  0x36   : > { %p104_p1 = scmp.ne.s32.totalorder %s990_s27, %s986_s26  ;;  %p1361_p3 = scmp.eq.s32.totalorder %s1157_s23, 0 }
  0x37   : > { %p224_p11 = scmp.eq.s32.totalorder %s1157_s23, 1  ;;  %p230_p0 = scmp.eq.s32.totalorder %s695_s10, 1 }
  0x38   : > { %p696_p2 = scmp.ge.s32.totalorder %s1006_s8, 1  ;;  %p1167_p4 = por %p1361_p3, %p104_p1 }
  0x39   : > { %p1380_p5 = scmp.ne.s32.totalorder %s994_s28, %s990_s27  ;;  %p1178_p8 = por %p230_p0, %p104_p1 }
  0x3a   : > { %s1379_s17 = scalar_select %p1167_p4, 1, 0 }
  0x3b   : > { %p1174_p6 = por %p224_p11, %p1380_p5  ;;  %p237_p10 = scmp.lt.s32.totalorder %s1006_s8, 3 }
  0x3c   : > { %s1382_s21 = scalar_select %p1178_p8, 1, 0 }
  0x3d   : > { %s1381_s19 = scalar_select %p1174_p6, 1, 0 }
  0x3e   : > { %1383 = sst [smem:[#allocation21_spill]] %s1382_s21  ;;  %s1384_s0 = sld [smem:[#allocation22_spill]] }
  0x3f   : > { %p1186_p12 = pnand %p696_p2, %p237_p10  ;;  %s1198_s11 = scalar_lea.hbm %s1348_s2, %s1107_s13 }
  0x40   : > { %s274_s18 = scalar_lea.vmem [#allocation7], %s1104_s12  ;;  %s1387_s3 = sand.u32 1, %s994_s28  }
  0x41   : > { %s1385_s25 = scalar_select %p1186_p12, 1, 0 }
  0x42   : > { %p736_p13 = pneg %p1186_p12  ;;  %s284_s16 = sshll.u32 %s274_s18, 4  ;;  %s285_s16 = int_to_ptr.vmem [resolvable:$true] %s284_s16 }
  0x43   : > { %s271_s1 = scalar_lea.sflag [#allocation4], %s1387_s3  ;;  %s841_s30 = scalar_lea.hbm %s1198_s11, 128 }
  0x44   : > { %s250_s20 = sshll.u32 %s1384_s0, 4  ;;  %p1203_p1 = pnand %p736_p13, %p1361_p3  ;;  %s1190_s20 = int_to_ptr.vmem [resolvable:$true] %s250_s20 }
  0x45   : > { %p842_p11 = scmp.ne.s32.totalorder %s1198_s11, %s841_s30  ;;  %s846_s15 = scalar_lea.hbm %s1348_s2, 256 }
  0x46   : > { %s1386_s0 = scalar_select %p1203_p1, 1, 0 }
  0x47   : > { %p844_p0 = pnand %p842_p11, %p1132_p9  ;;  %p847_p5 = scmp.lt.u32.totalorder %s1198_s11, %s1348_s2 }
  0x48   : > { %p848_p10 = scmp.lt.u32.totalorder %s846_s15, %s841_s30  ;;  %p850_p3 = scmp.lt.u32.totalorder %s841_s30, %s1198_s11 }
  0x49   : > { %p845_p2 = pneg %p844_p0 }
  0x4a   : > { %p849_p13 = por %p848_p10, %p847_p5 }
  0x4c   : > { %p851_p8 = por %p850_p3, %p849_p13 }
  0x4e   : > { %p852_p6 = pnand %p851_p8, %p845_p2 }
  0x50   : > { %855 = shalt.err (!%p852_p6)
}
  0x51   : > { %s856_s3 = scalar_lea.vmem %s285_s16, 128  ;;  %s1009_s18 = smov [#allocation7]  }
  0x52   : > { %p857_p4 = scmp.ne.s32.totalorder %s285_s16, %s856_s3  ;;  %s861_s28 = sshll.u32 %s1009_s18, 4  ;;  %s862_s28 = int_to_ptr.vmem [resolvable:$false] %s861_s28 }
  0x53   : > { %s863_s9 = scalar_lea.vmem %s862_s28, 256  ;;  %p864_p12 = scmp.lt.s32.totalorder %s285_s16, %s862_s28 }
  0x54   : > { %p859_p11 = pnand %p857_p4, %p1132_p9  ;;  %p865_p1 = scmp.lt.s32.totalorder %s863_s9, %s856_s3 }
  0x56   : > { %p860_p0 = pneg %p859_p11  ;;  %p866_p7 = por %p865_p1, %p864_p12 }
  0x58   : > { %p867_p5 = pnand %p866_p7, %p860_p0 }
  0x5a   : > { %870 = shalt.err (!%p867_p5)
}
  0x5b   : > { %p1388_p10 = scmp.ne.s32.totalorder %s1375_s14, 0  ;;  %s871_s30 = scalar_lea.vmem %s1190_s20, 16 }
  0x5c   : > { %p872_p3 = scmp.ne.s32.totalorder %s1190_s20, %s871_s30  ;;  %p1389_p4 = scmp.ne.s32.totalorder %s1386_s0, 0 }
  0x5d   : > { %743 = dma.hbm_to_vmem [thread:$0]  (!%p1388_p10), %s1198_s11, 128, %s285_s16, %s271_s1  }
  0x5e   : > { %p873_p6 = pneg %p1389_p4  ;;  %p879_p13 = scmp.lt.s32.totalorder %s1190_s20, %s1190_s20 }
  0x5f   : > { %p880_p11 = scmp.lt.s32.totalorder %s871_s30, %s871_s30 }
  0x60   : > { %p874_p8 = pnand %p873_p6, %p872_p3 }
  0x61   : > { %p881_p12 = por %p880_p11, %p879_p13 }
  0x62   : > { %p875_p2 = pneg %p874_p8 }
  0x64   : > { %p882_p7 = pnand %p881_p12, %p875_p2 }
  0x66   : > { %885 = shalt.err (!%p882_p7)
}
  0x67   : > { %s1010_s28 = smov [#allocation3]   ;;  %s1239_s11 = scalar_lea.hbm %s1350_s4, %s1107_s13 }
  0x68   : > { %739 = dma.vmem_to_smem (!%p1389_p4), %s1190_s20, 16, %s1010_s28, [#allocation6]  }
  0x69   : > { %s313_s15 = scalar_lea.vmem [#allocation10], %s1104_s12  ;;  %s886_s16 = scalar_lea.hbm %s1239_s11, 128 }
  0x6a   : > { %s320_s21 = sshll.u32 %s313_s15, 4  ;;  %p887_p1 = scmp.ne.s32.totalorder %s1239_s11, %s886_s16  ;;  %s321_s21 = int_to_ptr.vmem [resolvable:$true] %s320_s21 }
  0x6b   : > { %s891_s20 = scalar_lea.hbm %s1350_s4, 256  ;;  %p892_p3 = scmp.lt.u32.totalorder %s1239_s11, %s1350_s4 }
  0x6c   : > { %p889_p0 = pnand %p887_p1, %p1132_p9  ;;  %p893_p4 = scmp.lt.u32.totalorder %s891_s20, %s886_s16 }
  0x6d   : > { %p895_p8 = scmp.lt.u32.totalorder %s886_s16, %s1239_s11 }
  0x6e   : > { %p890_p5 = pneg %p889_p0  ;;  %p894_p6 = por %p893_p4, %p892_p3 }
  0x70   : > { %p896_p2 = por %p895_p8, %p894_p6 }
  0x72   : > { %p897_p13 = pnand %p896_p2, %p890_p5 }
  0x74   : > { %900 = shalt.err (!%p897_p13)
}
  0x75   : > { %s901_s12 = scalar_lea.vmem %s321_s21, 128  ;;  %s1011_s13 = smov [#allocation10]  }
  0x76   : > { %p902_p11 = scmp.ne.s32.totalorder %s321_s21, %s901_s12  ;;  %s906_s9 = sshll.u32 %s1011_s13, 4  ;;  %s907_s9 = int_to_ptr.vmem [resolvable:$false] %s906_s9 }
  0x77   : > { %s908_s30 = scalar_lea.vmem %s907_s9, 256  ;;  %p909_p1 = scmp.lt.s32.totalorder %s321_s21, %s907_s9 }
  0x78   : > { %p904_p12 = pnand %p902_p11, %p1132_p9  ;;  %p910_p0 = scmp.lt.s32.totalorder %s908_s30, %s901_s12 }
  0x7a   : > { %p905_p7 = pneg %p904_p12  ;;  %p911_p10 = por %p910_p0, %p909_p1 }
  0x7c   : > { %p912_p3 = pnand %p911_p10, %p905_p7 }
  0x7e   : > { %915 = shalt.err (!%p912_p3)
}
  0x7f   : > { %p1390_p4 = scmp.ne.s32.totalorder %s1375_s14, 0  ;;  %p1391_p5 = scmp.ne.s32.totalorder %s1385_s25, 0 }
  0x80   : > { %p1392_p9 = scmp.eq.s32.totalorder (!%p1391_p5), %s1157_s23, 0 }
  0x81   : > { %749 = dma.hbm_to_vmem [thread:$0]  (!%p1390_p4), %s1239_s11, 128, %s321_s21, %s1126_s22  }
  0x82   : > { %329 = sbr.rel (%p1391_p5) target bundleno = 385 (0x181), region = 48 }
  0x89   : > { %969 = dma.done.wait (%p1392_p9), [#allocation6], 16   ;;  %p1393_p6 = pmov %p1392_p9 }
  0x8a   : > { %s1267_s24 = sand.u32 1, %s990_s27   ;;  %p1394_p10 = scmp.ne.s32.totalorder %s1379_s17, 0 }
  0x8b   : > { %971 = vsyncadd (%p1393_p6), [#allocation6], 4294967280  ;;  %s1270_s28 = sshll.u32 %s1267_s24, 3  ;;  %s336_s14 = scalar_lea.sflag [#allocation4], %s1267_s24 }
  0x8c   : > { %s339_s22 = scalar_lea.vmem [#allocation7], %s1270_s28 }
  0x8d   : > { %973 = dma.done.wait (%p1394_p10), %s336_s14, 128  }
  0x8e   : > { %975 = vsyncadd (%p1394_p10), %s336_s14, 4294967168  ;;  %s344_s25 = sand.u32 1, %s1157_s23   ;;  %s348_s1 = scalar_lea.vmem [#allocation8], %s1270_s28 }
  0x8f   : > { %s345_s8 = scalar_lea.sflag [#allocation9], %s344_s25 }
  0x90   : > { %977 = dma.done.wait (%p1394_p10), %s345_s8, 256  }
  0x91   : > { %979 = vsyncadd (%p1394_p10), %s345_s8, 4294967040  ;;  %s357_s11 = scalar_lea.vmem [#allocation10], %s1270_s28 }
  0x92   : > { %362 = sfence }
  0x93   : > { %v445_v0 = vld [vmem:[%s339_s22] sm:$0xff]  ;;  %vm452_vm0 = vcmask 1043456   ;;  %v1012_v2 = vmov 0.0   ;;  %v409_v3 = vld [vmem:[%s348_s1] sm:$0xff]  ;;  %vm410_vm1 = vcmask 261120   ;;  %vm448_vm2 = vcmask 31744  }
  0x94   : > { %v447_v1 = vcombine.high %v445_v0, %v445_v0  ;;  %521 = vmatprep.mubr.f32.mxu0 %v1012_v2  ;;  %v420_v4 = vld [vmem:[%s357_s11] sm:$0xff]  ;;  %v411_v6 = vsel %vm410_vm1, %v409_v3, 0.0  ;;  %s401_s17 = sld [smem:[#allocation3 + %s998_s29]]  ;;  %vm430_vm3 = vcmask 257024   ;;  %s721_s12 = sshll.u32 %s998_s29, 7 }
  0x95   : > { %v444_v5 = vld [vmem:[%s1351_s5] sm:$0xf]  ;;  %v421_v7 = vsel %vm410_vm1, %v420_v4, 0.0  ;;  %v412_v8 = vrot.slane %v411_v6, 4  ;;  %s402_s20 = sld [smem:[#allocation2]]  ;;  %s398_s13 = scalar_lea.vmem [#allocation11], %s1270_s28 }
  0x96   : > { %712 = vmatprep.subr.msk.mxu0 %vm452_vm0, %v447_v1  ;;  %v422_v9 = vrot.slane %v421_v7, 4  ;;  %v408_v21 = vld [vmem:[%s1352_s6] sm:$0xf]  ;;  %s555_s9 = sshll.u32 %s398_s13, 4  ;;  %s1297_s22 = scalar_lea.hbm %s1353_s7, %s721_s12  ;;  %s1299_s9 = int_to_ptr.vmem [resolvable:$true] %s555_s9 }
  0x97   : > { %713 = vmatpush1.msk.msra.mxu0 %vm452_vm0, %v445_v0  ;;  %v413_v10 = vadd.f32 %v412_v8, %v411_v6  ;;  %s539_s25 = scalar_lea.sflag [#allocation5], %s1267_s24  ;;  %s916_s8 = scalar_lea.vmem %s1299_s9, 128 }
  0x98   : > { %714 = vmatmul.mubr.msk.f32.vlgmr.msra.gmra.mrb[0].mxu0 %vm448_vm2, %v444_v5  ;;  %v423_v11 = vadd.f32 %v422_v9, %v421_v7  ;;  %p917_p8 = scmp.ne.s32.totalorder %s1299_s9, %s916_s8  ;;  %p1395_p2 = scmp.ne.s32.totalorder %s1381_s19, 0 }
  0x99   : > { %v414_v12 = vrot.slane %v413_v10, 2  ;;  %s1013_s29 = smov [#allocation11]  }
  0x9a   : > { %v424_v13 = vrot.slane %v423_v11, 2  ;;  %s403_s21 = smul.f32 %s401_s17, %s401_s17  ;;  %p918_p13 = pnand %p917_p8, %p1395_p2 }
  0x9b   : > { %v415_v14 = vadd.f32 %v414_v12, %v413_v10  ;;  %s438_s3 = ssub.f32 1.0, %s402_s20  ;;  %v441_v32 = vstv %s402_s20  ;;  %s920_s28 = sshll.u32 %s1013_s29, 4  ;;  %s921_s28 = int_to_ptr.vmem [resolvable:$false] %s920_s28 }
  0x9c   : > { %v425_v15 = vadd.f32 %v424_v13, %v423_v11  ;;  %s404_s16 = sadd.f32 1.0, %s403_s21  ;;  %p919_p11 = pneg %p918_p13 }
  0x9d   : > { %v416_v16 = vrot.slane %v415_v14, 1  ;;  %v439_v30 = vstv %s438_s3  ;;  %s922_s1 = scalar_lea.vmem %s921_s28, 256  ;;  %p923_p12 = scmp.lt.s32.totalorder %s1299_s9, %s921_s28 }
  0x9e   : > { %v426_v17 = vrot.slane %v425_v15, 1  ;;  %v405_v18 = vstv %s404_s16  ;;  %p924_p7 = scmp.lt.s32.totalorder %s922_s1, %s916_s8 }
  0x9f   : > { %v417_v19 = vadd.f32 %v416_v16, %v415_v14  ;;  %809 = vrcp.f32 %v405_v18 }
  0xa0   : > { %v427_v20 = vadd.f32 %v426_v17, %v425_v15  ;;  %p925_p1 = por %p924_p7, %p923_p12 }
  0xa1   : > { %v419_v22 = vmul.f32 0.125, %v417_v19 }
  0xa2   : > { %v428_v23 = vmul.f32 0.125, %v427_v20  ;;  %p926_p0 = pnand %p925_p1, %p919_p11 }
  0xa3   : > { %v429_v24 = vmul.f32 %v419_v22, %v408_v21 }
  0xa4   : > { %v434_v25 = vmul.f32 %v428_v23, %v408_v21 }
  0xa5   : > { %v431_v26 = vsel %vm430_vm3, %v429_v24, 0.0 }
  0xa6   : > { %432 = vadd.xlane.f32.xlu0 %v431_v26  ;;  %v435_v27 = vsel %vm430_vm3, %v434_v25, 0.0 }
  0xa9   : > { %v810_v28 = vpop.eup %809 }
  0xaa   : > { %436 = vadd.xlane.f32.xlu0 %v435_v27  ;;  %722 = vpush %v810_v28 }
  0xdb   : > { %s723_s18 = spop %722 }
  0xdc   : > { %v528_v35 = vstv %s723_s18 }
 0x133   : > { %v433_v29 = vpop.xlane.xlu0 %432 }
 0x134   : > { %v440_v33 = vmul.f32 %v439_v30, %v433_v29 }
 0x137   : > { %v437_v31 = vpop.xlane.xlu0 %436 }
 0x138   : > { %v442_v34 = vmul.f32 %v441_v32, %v437_v31 }
 0x13a   : > { %v443_v37 = vadd.f32 %v442_v34, %v440_v33 }
 0x16b   : > { %v523_v36 = vpop.f32.mrb[0].mxu0 }
 0x16c   : > { %v529_v38 = vmul.f32 %v528_v35, %v523_v36  ;;  %v525_v39 = vpop.f32.mrb[1].mxu0 }
 0x16d   : > { %v530_v40 = vmul.f32 %v528_v35, %v525_v39 }
 0x16e   : > { %v531_v41 = vadd.f32 %v529_v38, %v443_v37 }
 0x16f   : > { %v532_v42 = vadd.f32 %v530_v40, %v443_v37 }
 0x171   : > { %v535_v43 = vcombine.low %v531_v41, %v532_v42 }
 0x173   : > { %537 = vst [vmem:[%s398_s13] sm:$0xff] %v535_v43 }
 0x174   : > { %929 = shalt.err (!%p926_p0)
}
 0x175   : > { %s930_s24 = scalar_lea.hbm %s1297_s22, 128  ;;  %s934_s15 = scalar_lea.hbm %s1353_s7, 256 }
 0x176   : > { %p931_p3 = scmp.ne.s32.totalorder %s1297_s22, %s930_s24  ;;  %p935_p9 = scmp.lt.u32.totalorder %s1297_s22, %s1353_s7 }
 0x177   : > { %p936_p6 = scmp.lt.u32.totalorder %s934_s15, %s930_s24  ;;  %p938_p8 = scmp.lt.u32.totalorder %s930_s24, %s1297_s22 }
 0x178   : > { %p932_p4 = pnand %p931_p3, %p1395_p2 }
 0x179   : > { %p937_p10 = por %p936_p6, %p935_p9 }
 0x17a   : > { %p933_p5 = pneg %p932_p4 }
 0x17b   : > { %p939_p13 = por %p938_p8, %p937_p10 }
 0x17d   : > { %p940_p11 = pnand %p939_p13, %p933_p5 }
 0x17f   : > { %943 = shalt.err (!%p940_p11)
}
 0x180   : > { %734 = dma.vmem_to_hbm [thread:$0]  (%p1395_p2), %s1299_s9, 128, %s1297_s22, %s539_s25  }
 0x181 PF: > { %s1396_s16 = sld [smem:[#allocation21_spill]]  ;;  %s1397_s0 = sld [smem:[#allocation18_spill]] }
 0x182   : > { %s567_s10 = sand.u32 1, %s986_s26  }
 0x183   : > { %s568_s20 = scalar_lea.sflag [#allocation5], %s567_s10 }
 0x187   : > { %p1398_p12 = scmp.ne.s32.totalorder %s1396_s16, 0  ;;  %p1399_p7 = scmp.ge.s32.totalorder %s1397_s0, 2 }
 0x189   : > { %p751_p1 = pnand %p1399_p7, %p1398_p12 }
 0x18b   : > { %981 = dma.done.wait (!%p751_p1), %s568_s20, 128  }
 0x18c   : > { %983 = vsyncadd (!%p751_p1), %s568_s20, 4294967168  ;;  %s28_s8 = sadd.s32 1, %s1397_s0   ;;  %s1400_s3 = sld [smem:[#allocation16_spill]] }
 0x18d   : > { %p25_p0 = scmp.ge.s32.totalorder %s28_s8, 4   ;;  %s1401_s28 = sld [smem:[#allocation20_spill]] }
 0x18e   : > { %s1402_s29 = sld [smem:[#allocation17_spill]]  ;;  %s1403_s30 = sld [smem:[#allocation19_spill]] }
 0x18f   : > { %s1404_s26 = smov %s990_s27  ;;  %27 = sbr.rel (!%p25_p0) target bundleno = 13 (0xd), region = 122 }
 0x192   : > { %s1405_s27 = smov %s1400_s3 }
 0x196   :  { %573 = vsyncpa [#allocation4], 1 }
 0x197   :  { %575 = vsyncpa [#allocation4 + $0x1], 1 }
 0x198   :  { %576 = vsyncpa [#allocation9], 1 }
 0x199   :  { %578 = vsyncpa [#allocation9 + $0x1], 1 }
 0x19a   :  { %579 = vsyncpa [#allocation5], 1 }
 0x19b   :  { %581 = vsyncpa [#allocation5 + $0x1], 1 }
 0x19c   :  { %582 = vsyncpa [#allocation6], 1 }
 0x19d   :  { %584 = vsyncpa [#allocation6 + $0x1], 1 }

</bundles_post_ra>
